<compile_context>
chip_gen: v5e
topology: v5e:2x2
jax: 0.10.0
libtpu: 0.0.40
codegen_flags: <defaults>
</compile_context>

<pallas_src>
import functools

import jax
import jax.numpy as jnp
from jax.experimental import pallas as pl
from jax.experimental.pallas import tpu as pltpu


def _round_up(x, m):
    return (x + m - 1) // m * m


# ---------------------------------------------------------------------------
# 1) PatientLevelEmbedding:  LayerNorm(x@Wx + ne@Wn + ce@Wc + b)
# ---------------------------------------------------------------------------
def _combine_ln_kernel(x_ref, ne_ref, ce_ref, wx_ref, wn_ref, wc_ref,
                       b_ref, g_ref, bt_ref, o_ref, *, eps, h_true):
    dims = (((1,), (0,)), ((), ()))      # (M,K)x(K,N): no transposed RHS operand
    y = jax.lax.dot_general(x_ref[...], wx_ref[...], dims,
                            preferred_element_type=jnp.float32)
    y = y + jax.lax.dot_general(ne_ref[...], wn_ref[...], dims,
                                preferred_element_type=jnp.float32)
    y = y + jax.lax.dot_general(ce_ref[...], wc_ref[...], dims,
                                preferred_element_type=jnp.float32)
    y = y + b_ref[...]                                   # (1, Hp) broadcast

    hp = y.shape[-1]
    if hp == h_true:                                     # no lane padding
        mean = jnp.mean(y, axis=-1, keepdims=True)
        centered = y - mean
        var = jnp.mean(centered * centered, axis=-1, keepdims=True)
    else:
        # Padded output columns of y are exactly zero (zero weight rows/bias),
        # so normalize statistics over the true H columns only.
        inv_h = 1.0 / h_true
        mean = jnp.sum(y, axis=-1, keepdims=True) * inv_h
        centered = y - mean
        col = jax.lax.broadcasted_iota(jnp.int32, y.shape, 1)
        cen_m = jnp.where(col < h_true, centered, 0.0)
        var = jnp.sum(cen_m * cen_m, axis=-1, keepdims=True) * inv_h

    inv = jax.lax.rsqrt(var + eps)
    # gamma/beta are zero in padded columns -> padded outputs are 0.
    o_ref[...] = (centered * (inv * g_ref[...]) + bt_ref[...]).astype(o_ref.dtype)


def patient_level_embedding(inputs, note_ids, chunk_ids, params, *, eps=1e-12,
                            tile_m=512, compute_dtype=jnp.bfloat16):
    """inputs: (B, S, H) f32; note_ids/chunk_ids: (B, S) int32 -> (B, S, H)."""
    B, S, H = inputs.shape
    M = B * S
    Hp = _round_up(H, 128)                   # lane-dense tiles and stores
    tile = min(tile_m, _round_up(M, 8))      # big row tile, clamped for demos
    M_pad = _round_up(M, tile)

    # --- plain-JAX glue: gathers + flatten + pad + bf16 cast ----------------
    ne = jnp.take(params["note_table"], note_ids.reshape(-1), axis=0)    # (M,H)
    ce = jnp.take(params["chunk_table"], chunk_ids.reshape(-1), axis=0)  # (M,H)
    x = inputs.reshape(M, H)

    def pad_rows(a):
        a = a.astype(compute_dtype)          # bf16 HBM streams (mem-bound stage)
        if M_pad == M and Hp == H:
            return a
        return jnp.pad(a, ((0, M_pad - M), (0, Hp - H)))

    x, ne, ce = pad_rows(x), pad_rows(ne), pad_rows(ce)

    # Split combine weight (H, 3H) (out,in) into three per-input blocks and
    # pre-transpose once to (in,out) so the kernel needs no concat/relayout.
    W = params["combine_w"]

    def prep_w(k):
        w = jnp.transpose(W[:, k * H:(k + 1) * H])       # (in, out) = (H, H)
        if Hp != H:
            w = jnp.pad(w, ((0, Hp - H), (0, Hp - H)))
        return w.astype(compute_dtype)

    Wx, Wn, Wc = prep_w(0), prep_w(1), prep_w(2)

    def pad_vec(v):
        if Hp != H:
            v = jnp.pad(v, (0, Hp - H))
        return v.reshape(1, Hp).astype(jnp.float32)

    b_k = pad_vec(params["combine_b"])
    g_k = pad_vec(params["ln_gamma"])
    bt_k = pad_vec(params["ln_beta"])

    row_spec = pl.BlockSpec((tile, Hp), lambda i: (i, 0))
    w_spec = pl.BlockSpec((Hp, Hp), lambda i: (0, 0))
    vec_spec = pl.BlockSpec((1, Hp), lambda i: (0, 0))

    out = pl.pallas_call(
        functools.partial(_combine_ln_kernel, eps=eps, h_true=H),
        out_shape=jax.ShapeDtypeStruct((M_pad, Hp), inputs.dtype),
        grid_spec=pltpu.PrefetchScalarGridSpec(
            num_scalar_prefetch=0,
            grid=(M_pad // tile,),
            in_specs=[row_spec, row_spec, row_spec,
                      w_spec, w_spec, w_spec, vec_spec, vec_spec, vec_spec],
            out_specs=row_spec,
        ),
        compiler_params=pltpu.CompilerParams(
            dimension_semantics=("parallel",),
            vmem_limit_bytes=32 * 1024 * 1024),
    )(x, ne, ce, Wx, Wn, Wc, b_k, g_k, bt_k)

    return out[:M, :H].reshape(B, S, H)


# ---------------------------------------------------------------------------
# 2) Bidirectional LSTM layer (PyTorch nn.LSTM, gate order i,f,g,o, h0=c0=0)
#    One kernel per layer: both directions, whole time loop in-kernel.
# ---------------------------------------------------------------------------
def _bilstm_layer_kernel(x_ref, wih_ref, whh_ref, b_ref, of_ref, ob_ref,
                         xw_scr, *, seq_len, batch_p, hp):
    S, Bp = seq_len, batch_p
    G = 4 * hp
    dims = (((1,), (0,)), ((), ()))

    # Hoisted input projection: ONE MXU matmul for the whole sequence and both
    # directions; columns [0:G] are fwd gates, [G:2G] bwd gates (order i,f,g,o).
    xw_scr[...] = jax.lax.dot_general(x_ref[...], wih_ref[...], dims,
                                      preferred_element_type=jnp.float32)

    w_f = whh_ref[0]                        # (hp, 4*hp) bf16, VMEM resident
    w_b = whh_ref[1]
    b_f = b_ref[0]                          # (1, 4*hp) f32
    b_b = b_ref[1]

    def gates_to_hc(pre, c):
        i = jax.nn.sigmoid(pre[:, 0 * hp:1 * hp])
        f = jax.nn.sigmoid(pre[:, 1 * hp:2 * hp])
        g = jnp.tanh(pre[:, 2 * hp:3 * hp])
        o = jax.nn.sigmoid(pre[:, 3 * hp:4 * hp])
        c_new = f * c + i * g
        return o * jnp.tanh(c_new), c_new

    def body(t, carry):
        h_f, c_f, h_b, c_b = carry
        row_f = pl.multiple_of(t * Bp, 8)                # fwd time index t
        row_b = pl.multiple_of((S - 1 - t) * Bp, 8)      # bwd time index S-1-t
        xw_f = xw_scr[pl.ds(row_f, Bp), :]               # (Bp, 2G) f32
        xw_b = xw_scr[pl.ds(row_b, Bp), :]
        pre_f = xw_f[:, :G] + b_f + jax.lax.dot_general(
            h_f.astype(w_f.dtype), w_f, dims, preferred_element_type=jnp.float32)
        pre_b = xw_b[:, G:] + b_b + jax.lax.dot_general(
            h_b.astype(w_b.dtype), w_b, dims, preferred_element_type=jnp.float32)
        h_f, c_f = gates_to_hc(pre_f, c_f)
        h_b, c_b = gates_to_hc(pre_b, c_b)
        of_ref[pl.ds(row_f, Bp), :] = h_f.astype(of_ref.dtype)
        ob_ref[pl.ds(row_b, Bp), :] = h_b.astype(ob_ref.dtype)
        return h_f, c_f, h_b, c_b

    zero = jnp.zeros((Bp, hp), jnp.float32)              # h0 = c0 = 0
    jax.lax.fori_loop(0, S, body, (zero, zero, zero, zero))


def _prep_bilstm_weights(lp, in_true, in_p, hh, hp, compute_dtype):
    """Pad & pre-transpose PyTorch LSTM weights to MXU-friendly (K, N) layout."""
    def per_dir(w_ih, w_hh, b_ih, b_hh):
        w_ih_g = jnp.pad(w_ih.reshape(4, hh, in_true),
                         ((0, 0), (0, hp - hh), (0, in_p - in_true)))
        w_hh_g = jnp.pad(w_hh.reshape(4, hh, hh),
                         ((0, 0), (0, hp - hh), (0, hp - hh)))
        b_g = jnp.pad((b_ih + b_hh).reshape(4, hh), ((0, 0), (0, hp - hh)))
        # (gate, out, in) -> (in, gate*hp + out): plain (K, N), gate order kept.
        wih_t = jnp.transpose(w_ih_g, (2, 0, 1)).reshape(in_p, 4 * hp)
        whh_t = jnp.transpose(w_hh_g, (2, 0, 1)).reshape(hp, 4 * hp)
        return wih_t, whh_t, b_g.reshape(1, 4 * hp)

    wf, hf, bf = per_dir(lp["w_ih_f"], lp["w_hh_f"], lp["b_ih_f"], lp["b_hh_f"])
    wb, hb, bb = per_dir(lp["w_ih_b"], lp["w_hh_b"], lp["b_ih_b"], lp["b_hh_b"])
    wih = jnp.concatenate([wf, wb], axis=1).astype(compute_dtype)   # (in_p, 8hp)
    whh = jnp.stack([hf, hb], axis=0).astype(compute_dtype)         # (2, hp, 4hp)
    bias = jnp.stack([bf, bb], axis=0).astype(jnp.float32)          # (2, 1, 4hp)
    return wih, whh, bias


def _bilstm_layer(x_flat, wih, whh, bias, *, seq_len, batch_p, hp):
    """x_flat: (S*Bp, In_p) bf16 time-major -> (of, ob): each (S, Bp, hp) f32."""
    SB, In_p = x_flat.shape
    G = 4 * hp
    of, ob = pl.pallas_call(
        functools.partial(_bilstm_layer_kernel, seq_len=seq_len,
                          batch_p=batch_p, hp=hp),
        out_shape=(jax.ShapeDtypeStruct((SB, hp), jnp.float32),
                   jax.ShapeDtypeStruct((SB, hp), jnp.float32)),
        grid_spec=pltpu.PrefetchScalarGridSpec(
            num_scalar_prefetch=0,
            grid=(1,),                       # whole recurrence inside the kernel
            in_specs=[pl.BlockSpec((SB, In_p), lambda i: (0, 0)),
                      pl.BlockSpec((In_p, 2 * G), lambda i: (0, 0)),
                      pl.BlockSpec((2, hp, G), lambda i: (0, 0, 0)),
                      pl.BlockSpec((2, 1, G), lambda i: (0, 0, 0))],
            out_specs=[pl.BlockSpec((SB, hp), lambda i: (0, 0)),
                       pl.BlockSpec((SB, hp), lambda i: (0, 0))],
            scratch_shapes=[pltpu.VMEM((SB, 2 * G), jnp.float32)],
        ),
        compiler_params=pltpu.CompilerParams(
            dimension_semantics=("arbitrary",)),
    )(x_flat, wih, whh, bias)
    return (of.reshape(seq_len, batch_p, hp),
            ob.reshape(seq_len, batch_p, hp))


# ---------------------------------------------------------------------------
# Full LSTMLayer forward (eval mode, labels=None path)
# ---------------------------------------------------------------------------
def lstm_layer_forward(embeds, note_ids, chunk_ids, params, *, eps=1e-12,
                       tile_m=512, compute_dtype=jnp.bfloat16):
    B, S, H = embeds.shape
    x = patient_level_embedding(embeds, note_ids, chunk_ids, params, eps=eps,
                                tile_m=tile_m, compute_dtype=compute_dtype)
    # dropout: identity (eval mode)

    hh = params["lstm"][0]["w_hh_f"].shape[-1]       # hidden per direction
    hp = _round_up(hh, 128)
    Hp = _round_up(H, 128)
    Bp = _round_up(B, 8)

    def to_kernel_input(a):                          # (B,S,F) -> (S*Bp, Hp) bf16
        a = jnp.transpose(a, (1, 0, 2))              # time-major
        a = jnp.pad(a, ((0, 0), (0, Bp - B), (0, Hp - a.shape[-1])))
        return a.astype(compute_dtype).reshape(S * Bp, Hp)

    x_flat = to_kernel_input(x)
    num_layers = len(params["lstm"])
    of_tm = ob_tm = None
    for li, lp in enumerate(params["lstm"]):
        wih, whh, bias = _prep_bilstm_weights(lp, H, Hp, hh, hp, compute_dtype)
        of_tm, ob_tm = _bilstm_layer(x_flat, wih, whh, bias,
                                     seq_len=S, batch_p=Bp, hp=hp)
        if li + 1 < num_layers:
            # PyTorch layer output layout: [h_fwd | h_bwd] along features.
            nxt = jnp.concatenate([of_tm[:, :, :hh], ob_tm[:, :, :hh]], axis=-1)
            nxt = jnp.pad(nxt, ((0, 0), (0, 0), (0, Hp - H)))
            x_flat = nxt.astype(compute_dtype).reshape(S * Bp, Hp)

    # lstm_out[:, -1, :]  = [fwd h(S-1) | bwd h at position S-1 (its 1st step)]
    final_h = jnp.concatenate([of_tm[S - 1, :B, :hh], ob_tm[S - 1, :B, :hh]],
                              axis=-1)               # (B, H)
    # dropout: identity (eval mode)
    # Classifier left to XLA: L=1 and tiny B -> pallas_call would be overhead.
    logits = final_h @ params["cls_w"].T + params["cls_b"]
    probs = jax.nn.sigmoid(logits)
    if probs.shape[-1] == 1:                         # .squeeze(-1)
        probs = probs[..., 0]
    return probs


# ---------------------------------------------------------------------------
# Pure-JAX reference
# ---------------------------------------------------------------------------
def _reference_forward(embeds, note_ids, chunk_ids, params, eps=1e-12):
    ne = jnp.take(params["note_table"], note_ids, axis=0)
    ce = jnp.take(params["chunk_table"], chunk_ids, axis=0)
    xcat = jnp.concatenate([embeds, ne, ce], axis=2)
    y = jnp.einsum("bsk,hk->bsh", xcat, params["combine_w"]) + params["combine_b"]
    mean = jnp.mean(y, -1, keepdims=True)
    var = jnp.mean((y - mean) ** 2, -1, keepdims=True)
    x = (y - mean) * jax.lax.rsqrt(var + eps) * params["ln_gamma"] + params["ln_beta"]

    def lstm_dir(xs, w_ih, w_hh, b):
        Bb = xs.shape[0]
        hh = w_hh.shape[1]

        def step(carry, x_t):
            h, c = carry
            gates = x_t @ w_ih.T + h @ w_hh.T + b
            i = jax.nn.sigmoid(gates[:, 0 * hh:1 * hh])
            f = jax.nn.sigmoid(gates[:, 1 * hh:2 * hh])
            g = jnp.tanh(gates[:, 2 * hh:3 * hh])
            o = jax.nn.sigmoid(gates[:, 3 * hh:4 * hh])
            c = f * c + i * g
            h = o * jnp.tanh(c)
            return (h, c), h

        init = (jnp.zeros((Bb, hh), xs.dtype), jnp.zeros((Bb, hh), xs.dtype))
        _, hs = jax.lax.scan(step, init, jnp.transpose(xs, (1, 0, 2)))
        return jnp.transpose(hs, (1, 0, 2))

    out = x
    for lp in params["lstm"]:
        fwd = lstm_dir(out, lp["w_ih_f"], lp["w_hh_f"], lp["b_ih_f"] + lp["b_hh_f"])
        bwd = lstm_dir(out[:, ::-1, :], lp["w_ih_b"], lp["w_hh_b"],
                       lp["b_ih_b"] + lp["b_hh_b"])[:, ::-1, :]
        out = jnp.concatenate([fwd, bwd], axis=-1)

    final_h = out[:, -1, :]
    logits = final_h @ params["cls_w"].T + params["cls_b"]
    probs = jax.nn.sigmoid(logits)
    if probs.shape[-1] == 1:
        probs = probs[..., 0]
    return probs, x


if __name__ == "__main__":
    # Small config consistent with the module: embed_mode='all', bidirectional.
    B, S, H = 2, 8, 32                     # batch, seq_len, hidden_size
    hh = H // 2                            # LSTM hidden per direction
    lstm_layers = 1
    num_labels = 1
    max_note_pos, max_chunk_pos = 64, 64
    eps = 1e-12
    std = 0.02

    key = jax.random.PRNGKey(0)
    ks = jax.random.split(key, 16)

    def lstm_layer_params(k):
        kk = jax.random.split(k, 8)
        return {
            "w_ih_f": jax.random.normal(kk[0], (4 * hh, H), jnp.float32) * std,
            "w_hh_f": jax.random.normal(kk[1], (4 * hh, hh), jnp.float32) * std,
            "b_ih_f": jax.random.normal(kk[2], (4 * hh,), jnp.float32) * std,
            "b_hh_f": jax.random.normal(kk[3], (4 * hh,), jnp.float32) * std,
            "w_ih_b": jax.random.normal(kk[4], (4 * hh, H), jnp.float32) * std,
            "w_hh_b": jax.random.normal(kk[5], (4 * hh, hh), jnp.float32) * std,
            "b_ih_b": jax.random.normal(kk[6], (4 * hh,), jnp.float32) * std,
            "b_hh_b": jax.random.normal(kk[7], (4 * hh,), jnp.float32) * std,
        }

    params = {
        "note_table": jax.random.normal(ks[0], (max_note_pos, H), jnp.float32) * std,
        "chunk_table": jax.random.normal(ks[1], (max_chunk_pos, H), jnp.float32) * std,
        "combine_w": jax.random.normal(ks[2], (H, 3 * H), jnp.float32) * std,  # (out,in)
        "combine_b": jax.random.normal(ks[3], (H,), jnp.float32) * std,
        "ln_gamma": jnp.ones((H,), jnp.float32),
        "ln_beta": jnp.zeros((H,), jnp.float32),
        "lstm": [lstm_layer_params(ks[4 + i]) for i in range(lstm_layers)],
        "cls_w": jax.random.normal(ks[10], (num_labels, H), jnp.float32) * std,
        "cls_b": jnp.zeros((num_labels,), jnp.float32),
    }

    embeds = jax.random.normal(ks[11], (B, S, H), jnp.float32)
    note_ids = jax.random.randint(ks[12], (B, S), 0, max_note_pos, jnp.int32)
    chunk_ids = jax.random.randint(ks[13], (B, S), 0, max_chunk_pos, jnp.int32)

    # Pallas forward
    probs = lstm_layer_forward(embeds, note_ids, chunk_ids, params, eps=eps)
    probs = jax.block_until_ready(probs)

    # Validate against a pure-JAX reference (embedding stage + full forward).
    emb = patient_level_embedding(embeds, note_ids, chunk_ids, params, eps=eps)
    emb = jax.block_until_ready(emb)
    probs_ref, emb_ref = _reference_forward(embeds, note_ids, chunk_ids, params, eps)

    assert probs.shape == (B,)
    # Embedding matmuls use bf16 MXU operands (f32 accumulate) -> looser tol.
    assert jnp.allclose(emb, emb_ref, atol=5e-2, rtol=5e-2), \
        float(jnp.max(jnp.abs(emb - emb_ref)))
    assert jnp.allclose(probs, probs_ref, atol=2e-3, rtol=2e-3), \
        float(jnp.max(jnp.abs(probs - probs_ref)))
    print("KERNEL_OK")
</pallas_src>

<mosaic_0001>
module attributes {stable_mosaic.version = 11 : i64} {
  func.func @_combine_ln_kernel(%arg0: i32, %arg1: memref<16x128xbf16, #tpu.memory_space<vmem>>, %arg2: memref<16x128xbf16, #tpu.memory_space<vmem>>, %arg3: memref<16x128xbf16, #tpu.memory_space<vmem>>, %arg4: memref<128x128xbf16, #tpu.memory_space<vmem>>, %arg5: memref<128x128xbf16, #tpu.memory_space<vmem>>, %arg6: memref<128x128xbf16, #tpu.memory_space<vmem>>, %arg7: memref<1x128xf32, #tpu.memory_space<vmem>>, %arg8: memref<1x128xf32, #tpu.memory_space<vmem>>, %arg9: memref<1x128xf32, #tpu.memory_space<vmem>>, %arg10: memref<16x128xf32, #tpu.memory_space<vmem>>) attributes {dimension_semantics = [#tpu.dimension_semantics<parallel>], iteration_bounds = array<i64: 1>, scalar_prefetch = 0 : i64, scratch_operands = 0 : i64, tpu.core_type = #tpu.core_type<tc>, window_params = [{transform_indices = @transform_0, window_bounds = array<i64: 16, 128>}, {transform_indices = @transform_1, window_bounds = array<i64: 16, 128>}, {transform_indices = @transform_2, window_bounds = array<i64: 16, 128>}, {pipeline_mode = #tpu.pipeline_mode<synchronous>, transform_indices = @transform_3, window_bounds = array<i64: 128, 128>}, {pipeline_mode = #tpu.pipeline_mode<synchronous>, transform_indices = @transform_4, window_bounds = array<i64: 128, 128>}, {pipeline_mode = #tpu.pipeline_mode<synchronous>, transform_indices = @transform_5, window_bounds = array<i64: 128, 128>}, {pipeline_mode = #tpu.pipeline_mode<synchronous>, transform_indices = @transform_6, window_bounds = array<i64: 1, 128>}, {pipeline_mode = #tpu.pipeline_mode<synchronous>, transform_indices = @transform_7, window_bounds = array<i64: 1, 128>}, {pipeline_mode = #tpu.pipeline_mode<synchronous>, transform_indices = @transform_8, window_bounds = array<i64: 1, 128>}, {transform_indices = @transform_9, window_bounds = array<i64: 16, 128>}]} {
    %c0 = arith.constant 0 : index
    %c0_0 = arith.constant 0 : index
    %0 = vector.load %arg1[%c0, %c0_0] : memref<16x128xbf16, #tpu.memory_space<vmem>>, vector<16x128xbf16>
    %c0_1 = arith.constant 0 : index
    %c0_2 = arith.constant 0 : index
    %1 = vector.load %arg4[%c0_1, %c0_2] : memref<128x128xbf16, #tpu.memory_space<vmem>>, vector<128x128xbf16>
    %cst = arith.constant dense<0.000000e+00> : vector<16x128xf32>
    %2 = tpu.matmul %0, %1, %cst {dimension_numbers = #tpu.dot_dimension_numbers<[1], [0], [0], [1], [0, 0, 1, 1], [], []>} : vector<16x128xbf16>, vector<128x128xbf16>, vector<16x128xf32> -> vector<16x128xf32>
    %c0_3 = arith.constant 0 : index
    %c0_4 = arith.constant 0 : index
    %3 = vector.load %arg2[%c0_3, %c0_4] : memref<16x128xbf16, #tpu.memory_space<vmem>>, vector<16x128xbf16>
    %c0_5 = arith.constant 0 : index
    %c0_6 = arith.constant 0 : index
    %4 = vector.load %arg5[%c0_5, %c0_6] : memref<128x128xbf16, #tpu.memory_space<vmem>>, vector<128x128xbf16>
    %cst_7 = arith.constant dense<0.000000e+00> : vector<16x128xf32>
    %5 = tpu.matmul %3, %4, %cst_7 {dimension_numbers = #tpu.dot_dimension_numbers<[1], [0], [0], [1], [0, 0, 1, 1], [], []>} : vector<16x128xbf16>, vector<128x128xbf16>, vector<16x128xf32> -> vector<16x128xf32>
    %6 = arith.addf %2, %5 : vector<16x128xf32>
    %c0_8 = arith.constant 0 : index
    %c0_9 = arith.constant 0 : index
    %7 = vector.load %arg3[%c0_8, %c0_9] : memref<16x128xbf16, #tpu.memory_space<vmem>>, vector<16x128xbf16>
    %c0_10 = arith.constant 0 : index
    %c0_11 = arith.constant 0 : index
    %8 = vector.load %arg6[%c0_10, %c0_11] : memref<128x128xbf16, #tpu.memory_space<vmem>>, vector<128x128xbf16>
    %cst_12 = arith.constant dense<0.000000e+00> : vector<16x128xf32>
    %9 = tpu.matmul %7, %8, %cst_12 {dimension_numbers = #tpu.dot_dimension_numbers<[1], [0], [0], [1], [0, 0, 1, 1], [], []>} : vector<16x128xbf16>, vector<128x128xbf16>, vector<16x128xf32> -> vector<16x128xf32>
    %10 = arith.addf %6, %9 : vector<16x128xf32>
    %c0_13 = arith.constant 0 : index
    %c0_14 = arith.constant 0 : index
    %11 = vector.load %arg7[%c0_13, %c0_14] : memref<1x128xf32, #tpu.memory_space<vmem>>, vector<1x128xf32>
    %12 = vector.broadcast %11 : vector<1x128xf32> to vector<16x128xf32>
    %13 = arith.addf %10, %12 : vector<16x128xf32>
    %cst_15 = arith.constant dense<0.000000e+00> : vector<16xf32>
    %14 = vector.multi_reduction <add>, %13, %cst_15 [1] : vector<16x128xf32> to vector<16xf32>
    %15 = vector.shape_cast %14 : vector<16xf32> to vector<16x1xf32>
    %cst_16 = arith.constant 3.125000e-02 : f32
    %16 = vector.broadcast %cst_16 : f32 to vector<16x1xf32>
    %17 = arith.mulf %15, %16 : vector<16x1xf32>
    %18 = vector.broadcast %17 : vector<16x1xf32> to vector<16x128xf32>
    %19 = arith.subf %13, %18 : vector<16x128xf32>
    %20 = tpu.iota {dimensions = array<i32: 1>} : vector<16x128xi32>
    %c32_i32 = arith.constant 32 : i32
    %21 = vector.broadcast %c32_i32 : i32 to vector<16x128xi32>
    %22 = arith.cmpi slt, %20, %21 : vector<16x128xi32>
    %cst_17 = arith.constant 0.000000e+00 : f32
    %23 = vector.broadcast %cst_17 : f32 to vector<16x128xf32>
    %24 = arith.select %22, %19, %23 : vector<16x128xi1>, vector<16x128xf32>
    %25 = arith.mulf %24, %24 : vector<16x128xf32>
    %cst_18 = arith.constant dense<0.000000e+00> : vector<16xf32>
    %26 = vector.multi_reduction <add>, %25, %cst_18 [1] : vector<16x128xf32> to vector<16xf32>
    %27 = vector.shape_cast %26 : vector<16xf32> to vector<16x1xf32>
    %cst_19 = arith.constant 3.125000e-02 : f32
    %28 = vector.broadcast %cst_19 : f32 to vector<16x1xf32>
    %29 = arith.mulf %27, %28 : vector<16x1xf32>
    %cst_20 = arith.constant 9.99999996E-13 : f32
    %30 = vector.broadcast %cst_20 : f32 to vector<16x1xf32>
    %31 = arith.addf %29, %30 : vector<16x1xf32>
    %32 = math.rsqrt %31 : vector<16x1xf32>
    %c0_21 = arith.constant 0 : index
    %c0_22 = arith.constant 0 : index
    %33 = vector.load %arg8[%c0_21, %c0_22] : memref<1x128xf32, #tpu.memory_space<vmem>>, vector<1x128xf32>
    %34 = vector.broadcast %32 : vector<16x1xf32> to vector<16x128xf32>
    %35 = vector.broadcast %33 : vector<1x128xf32> to vector<16x128xf32>
    %36 = arith.mulf %34, %35 : vector<16x128xf32>
    %37 = arith.mulf %19, %36 : vector<16x128xf32>
    %c0_23 = arith.constant 0 : index
    %c0_24 = arith.constant 0 : index
    %38 = vector.load %arg9[%c0_23, %c0_24] : memref<1x128xf32, #tpu.memory_space<vmem>>, vector<1x128xf32>
    %39 = vector.broadcast %38 : vector<1x128xf32> to vector<16x128xf32>
    %40 = arith.addf %37, %39 : vector<16x128xf32>
    %c0_25 = arith.constant 0 : index
    %c0_26 = arith.constant 0 : index
    %41 = vector.load %arg10[%c0_25, %c0_26] : memref<16x128xf32, #tpu.memory_space<vmem>>, vector<16x128xf32>
    tpu.vector_store %arg10[%c0_25, %c0_26], %40 {strides = array<i32>} : memref<16x128xf32, #tpu.memory_space<vmem>>, vector<16x128xf32>,
    return
  }
  func.func @transform_0(%arg0: i32) -> (i32, i32) {
    %c0_i32 = arith.constant 0 : i32
    %c0_i32_0 = arith.constant 0 : i32
    return %arg0, %c0_i32 : i32, i32
  }
  func.func @transform_1(%arg0: i32) -> (i32, i32) {
    %c0_i32 = arith.constant 0 : i32
    %c0_i32_0 = arith.constant 0 : i32
    return %arg0, %c0_i32 : i32, i32
  }
  func.func @transform_2(%arg0: i32) -> (i32, i32) {
    %c0_i32 = arith.constant 0 : i32
    %c0_i32_0 = arith.constant 0 : i32
    return %arg0, %c0_i32 : i32, i32
  }
  func.func @transform_3(%arg0: i32) -> (i32, i32) {
    %c0_i32 = arith.constant 0 : i32
    %c0_i32_0 = arith.constant 0 : i32
    %c0_i32_1 = arith.constant 0 : i32
    return %c0_i32, %c0_i32_0 : i32, i32
  }
  func.func @transform_4(%arg0: i32) -> (i32, i32) {
    %c0_i32 = arith.constant 0 : i32
    %c0_i32_0 = arith.constant 0 : i32
    %c0_i32_1 = arith.constant 0 : i32
    return %c0_i32, %c0_i32_0 : i32, i32
  }
  func.func @transform_5(%arg0: i32) -> (i32, i32) {
    %c0_i32 = arith.constant 0 : i32
    %c0_i32_0 = arith.constant 0 : i32
    %c0_i32_1 = arith.constant 0 : i32
    return %c0_i32, %c0_i32_0 : i32, i32
  }
  func.func @transform_6(%arg0: i32) -> (i32, i32) {
    %c0_i32 = arith.constant 0 : i32
    %c0_i32_0 = arith.constant 0 : i32
    %c0_i32_1 = arith.constant 0 : i32
    return %c0_i32, %c0_i32_0 : i32, i32
  }
  func.func @transform_7(%arg0: i32) -> (i32, i32) {
    %c0_i32 = arith.constant 0 : i32
    %c0_i32_0 = arith.constant 0 : i32
    %c0_i32_1 = arith.constant 0 : i32
    return %c0_i32, %c0_i32_0 : i32, i32
  }
  func.func @transform_8(%arg0: i32) -> (i32, i32) {
    %c0_i32 = arith.constant 0 : i32
    %c0_i32_0 = arith.constant 0 : i32
    %c0_i32_1 = arith.constant 0 : i32
    return %c0_i32, %c0_i32_0 : i32, i32
  }
  func.func @transform_9(%arg0: i32) -> (i32, i32) {
    %c0_i32 = arith.constant 0 : i32
    %c0_i32_0 = arith.constant 0 : i32
    return %arg0, %c0_i32 : i32, i32
  }
}

</mosaic_0001>

<bundles_post_ra>
// kernel: tpu_custom_call.1
= control target key start
LH: loop header
LB: loop body
LE: loop exit
PB: predicated region body
PF: predicated region fallthrough
CT: control target
= control target key end

     0   :  { %14 = vsyncpa [#allocation3], 0  ;;  %s914_s0 = inlined_call_operand.hbm [shape: bf16[16,128], index: 0, kind: input, shape index: {}]   ;;  %s915_s1 = inlined_call_operand.hbm [shape: bf16[16,128], index: 1, kind: input, shape index: {}]   ;;  %s916_s2 = inlined_call_operand.hbm [shape: bf16[16,128], index: 2, kind: input, shape index: {}]   ;;  %s917_s3 = inlined_call_operand.hbm [shape: bf16[128,128], index: 3, kind: input, shape index: {}]   ;;  %s918_s4 = inlined_call_operand.hbm [shape: bf16[128,128], index: 4, kind: input, shape index: {}]   ;;  %s919_s5 = inlined_call_operand.hbm [shape: bf16[128,128], index: 5, kind: input, shape index: {}]   ;;  %s920_s6 = inlined_call_operand.vmem [shape: f32[1,128], index: 6, kind: input, shape index: {}]   ;;  %s921_s7 = inlined_call_operand.vmem [shape: f32[1,128], index: 7, kind: input, shape index: {}]   ;;  %s922_s8 = inlined_call_operand.vmem [shape: f32[1,128], index: 8, kind: input, shape index: {}]   ;;  %s923_s9 = inlined_call_operand.hbm [shape: f32[16,128], index: 9, kind: output, shape index: {}]  }
   0x1   :  { %15 = vsyncpa [#allocation6], 0 }
   0x2   :  { %16 = vsyncpa [#allocation9], 0 }
   0x3   :  { %17 = vsyncpa [#allocation12], 0 }
   0x4   :  { %18 = vsyncpa [#allocation4], 0  ;;  %s36_s11 = sshll.u32 %s915_s1, 4  ;;  %s805_s12 = smov [#allocation5]   ;;  %s37_s11 = int_to_ptr.hbm [resolvable:$true] %s36_s11 }
   0x5   :  { %s38_s13 = sshll.u32 %s805_s12, 4  ;;  %s62_s16 = sshll.u32 %s917_s3, 4  ;;  %s39_s13 = int_to_ptr.vmem [resolvable:$true] %s38_s13  ;;  %s63_s16 = int_to_ptr.hbm [resolvable:$true] %s62_s16 }
   0x6   :  { %s806_s17 = smov 64   ;;  %s807_s18 = smov 4  }
   0x7   :  { %44 = dma.hbm_to_vmem [thread:$0]  %s37_s11, 128, %s39_s13, [#allocation6], %s806_s17, %s806_s17, %s807_s18  }
   0x8   :  { %s808_s19 = smov [#allocation8]   ;;  %s23_s1 = sshll.u32 %s914_s0, 4  ;;  %s24_s1 = int_to_ptr.hbm [resolvable:$true] %s23_s1 }
   0x9   :  { %s64_s20 = sshll.u32 %s808_s19, 4  ;;  %s49_s24 = sshll.u32 %s916_s2, 4  ;;  %s65_s20 = int_to_ptr.vmem [resolvable:$true] %s64_s20  ;;  %s50_s24 = int_to_ptr.hbm [resolvable:$true] %s49_s24 }
   0xa   :  { %70 = dma.hbm_to_vmem [thread:$0]  %s63_s16, 1024, %s65_s20, [#allocation9], %s806_s17, %s806_s17, %s807_s18  }
   0xb   :  { %s809_s25 = smov [#allocation2]   ;;  %s810_s27 = smov [#allocation7]  }
   0xc   :  { %s25_s26 = sshll.u32 %s809_s25, 4  ;;  %s51_s0 = sshll.u32 %s810_s27, 4  ;;  %s26_s26 = int_to_ptr.vmem [resolvable:$true] %s25_s26  ;;  %s52_s0 = int_to_ptr.vmem [resolvable:$true] %s51_s0 }
   0xd   :  { %31 = dma.hbm_to_vmem [thread:$0]  %s24_s1, 128, %s26_s26, [#allocation3], %s806_s17, %s806_s17, %s807_s18  }
   0xe   :  { %s75_s30 = sshll.u32 %s918_s4, 4  ;;  %s88_s11 = sshll.u32 %s919_s5, 4  ;;  %s76_s30 = int_to_ptr.hbm [resolvable:$true] %s75_s30  ;;  %s89_s11 = int_to_ptr.hbm [resolvable:$true] %s88_s11 }
   0xf   :  { %57 = dma.hbm_to_vmem [thread:$0]  %s50_s24, 128, %s52_s0, [#allocation6], %s806_s17, %s806_s17, %s807_s18  }
  0x10   :  { %s811_s12 = smov [#allocation10]   ;;  %s812_s14 = smov [#allocation11]  }
  0x11   :  { %s77_s13 = sshll.u32 %s811_s12, 4  ;;  %s90_s4 = sshll.u32 %s812_s14, 4  ;;  %s78_s13 = int_to_ptr.vmem [resolvable:$true] %s77_s13  ;;  %s91_s4 = int_to_ptr.vmem [resolvable:$true] %s90_s4 }
  0x12   :  { %83 = dma.hbm_to_vmem [thread:$0]  %s76_s30, 1024, %s78_s13, [#allocation9], %s806_s17, %s806_s17, %s807_s18  }
  0x13   :  { %96 = dma.hbm_to_vmem [thread:$0]  %s89_s11, 1024, %s91_s4, [#allocation12], %s806_s17, %s806_s17, %s807_s18  }
  0x14   :  { %795 = dma.done.wait [#allocation3], 128  }
  0x15   :  { %796 = vsyncadd [#allocation3], 4294967168 }
  0x16   :  { %797 = dma.done.wait [#allocation6], 256  }
  0x17   :  { %798 = vsyncadd [#allocation6], 4294967040 }
  0x18   :  { %799 = dma.done.wait [#allocation9], 2048  }
  0x19   :  { %800 = vsyncadd [#allocation9], 4294965248 }
  0x1a   :  { %801 = dma.done.wait [#allocation12], 1024  }
  0x1b   :  { %802 = vsyncadd [#allocation12], 4294966272  ;;  %v599_v0 = vld [vmem:[#allocation10 + $0x38] sm:$0xff]  ;;  %v598_v3 = vld [vmem:[#allocation10 + $0x30] sm:$0xff]  ;;  %v401_v40 = vlaneseq  ;;  %s458_s22 = sshll.u32 %s923_s9, 4  ;;  %s815_s1 = smov 8   ;;  %s459_s22 = int_to_ptr.hbm [resolvable:$true] %s458_s22 }
  0x1c   :  { %v590_v1 = vld [vmem:[#allocation8 + $0x38] sm:$0xff]  ;;  %217 = vmatpush.bf16.msra.mxu0 %v599_v0  ;;  %v589_v4 = vld [vmem:[#allocation8 + $0x30] sm:$0xff]  ;;  %v597_v6 = vld [vmem:[#allocation10 + $0x28] sm:$0xff] }
  0x1d   :  { %v608_v2 = vld [vmem:[#allocation11 + $0x38] sm:$0xff]  ;;  %285 = vmatpush.bf16.msra.mxu1 %v590_v1  ;;  %v607_v5 = vld [vmem:[#allocation11 + $0x30] sm:$0xff]  ;;  %v588_v7 = vld [vmem:[#allocation8 + $0x28] sm:$0xff]  ;;  %v402_v41 = vand.u32 127, %v401_v40 }
  0x1e   :  { %371 = vmatpush.bf16.msra.mxu2 %v608_v2  ;;  %v606_v8 = vld [vmem:[#allocation11 + $0x28] sm:$0xff]  ;;  %v596_v9 = vld [vmem:[#allocation10 + $0x20] sm:$0xff]  ;;  %v595_v12 = vld [vmem:[#allocation10 + $0x18] sm:$0xff] }
  0x1f   :  { %v587_v10 = vld [vmem:[#allocation8 + $0x20] sm:$0xff]  ;;  %v586_v13 = vld [vmem:[#allocation8 + $0x18] sm:$0xff]  ;;  %v594_v15 = vld [vmem:[#allocation10 + $0x10] sm:$0xff]  ;;  %vm403_vm0 = vcmp.lt.s32.totalorder %v402_v41, 32 }
  0x20   :  { %218 = vmatpush.bf16.msra.mxu0 %v598_v3  ;;  %v605_v11 = vld [vmem:[#allocation11 + $0x20] sm:$0xff]  ;;  %v604_v14 = vld [vmem:[#allocation11 + $0x18] sm:$0xff]  ;;  %v585_v16 = vld [vmem:[#allocation8 + $0x10] sm:$0xff] }
  0x21   :  { %286 = vmatpush.bf16.msra.mxu1 %v589_v4  ;;  %v603_v17 = vld [vmem:[#allocation11 + $0x10] sm:$0xff]  ;;  %v593_v18 = vld [vmem:[#allocation10 + $0x8] sm:$0xff]  ;;  %v592_v21 = vld [vmem:[#allocation10] sm:$0xff] }
  0x22   :  { %372 = vmatpush.bf16.msra.mxu2 %v607_v5  ;;  %v584_v19 = vld [vmem:[#allocation8 + $0x8] sm:$0xff]  ;;  %v583_v22 = vld [vmem:[#allocation8] sm:$0xff]  ;;  %v591_v24 = vld [vmem:[#allocation5] sm:$0xff] }
  0x23   :  { %v602_v20 = vld [vmem:[#allocation11 + $0x8] sm:$0xff]  ;;  %v601_v23 = vld [vmem:[#allocation11] sm:$0xff]  ;;  %v600_v26 = vld [vmem:[#allocation7] sm:$0xff] }
  0x24   :  { %219 = vmatpush.bf16.msra.mxu0 %v597_v6  ;;  %v582_v25 = vld [vmem:[#allocation2] sm:$0xff] }
  0x25   :  { %287 = vmatpush.bf16.msra.mxu1 %v588_v7  ;;  %v620_v30 = vld [vmem:[%s920_s6] ss:$0 sm:$0xff] }
  0x26   :  { %373 = vmatpush.bf16.msra.mxu2 %v606_v8  ;;  %v621_v0 = vld [vmem:[%s921_s7] ss:$0 sm:$0xff]  ;;  %s813_s7 = smov [#allocation13]  }
  0x27   :  { %v622_v6 = vld [vmem:[%s922_s8] ss:$0 sm:$0xff]  ;;  %s456_s19 = sshll.u32 %s813_s7, 4  ;;  %s814_s8 = smov 128   ;;  %s457_s19 = int_to_ptr.vmem [resolvable:$true] %s456_s19 }
  0x28   :  { %220 = vmatpush.bf16.msra.mxu0 %v596_v9 }
  0x29   :  { %288 = vmatpush.bf16.msra.mxu1 %v587_v10 }
  0x2a   :  { %374 = vmatpush.bf16.msra.mxu2 %v605_v11 }
  0x2c   :  { %221 = vmatpush.bf16.msra.mxu0 %v595_v12 }
  0x2d   :  { %289 = vmatpush.bf16.msra.mxu1 %v586_v13 }
  0x2e   :  { %375 = vmatpush.bf16.msra.mxu2 %v604_v14 }
  0x30   :  { %222 = vmatpush.bf16.msra.mxu0 %v594_v15 }
  0x31   :  { %290 = vmatpush.bf16.msra.mxu1 %v585_v16 }
  0x32   :  { %376 = vmatpush.bf16.msra.mxu2 %v603_v17 }
  0x34   :  { %223 = vmatpush.bf16.msra.mxu0 %v593_v18 }
  0x35   :  { %291 = vmatpush.bf16.msra.mxu1 %v584_v19 }
  0x36   :  { %377 = vmatpush.bf16.msra.mxu2 %v602_v20 }
  0x38   :  { %224 = vmatpush.bf16.msra.mxu0 %v592_v21 }
  0x39   :  { %292 = vmatpush.bf16.msra.mxu1 %v583_v22 }
  0x3a   :  { %378 = vmatpush.bf16.msra.mxu2 %v601_v23 }
  0x3b   :  { %225 = vmatmul.bf16.vlgmr.msra.gmra.mxu0 %v591_v24 }
  0x3c   :  { %293 = vmatmul.bf16.vlgmr.msra.gmra.mxu1 %v582_v25 }
  0x3d   :  { %379 = vmatmul.bf16.vlgmr.msra.gmra.mxu2 %v600_v26 }
  0xb8   :  { %v226_v27 = vpop.f32.mrf.mxu0 }
  0xb9   :  { %v294_v28 = vpop.f32.mrf.mxu1 }
  0xba   :  { %v295_v29 = vadd.f32 %v294_v28, %v226_v27 }
  0xc0   :  { %v380_v31 = vpop.f32.mrf.mxu2  ;;  %v228_v34 = vpop.f32.mrf.mxu0 }
  0xc1   :  { %v385_v32 = vadd.f32 %v380_v31, %v295_v29  ;;  %v296_v35 = vpop.f32.mrf.mxu1 }
  0xc2   :  { %v297_v36 = vadd.f32 %v296_v35, %v228_v34 }
  0xc3   :  { %v391_v33 = vadd.f32 %v620_v30, %v385_v32 }
  0xc5   :  { %393 = vadd.xlane.f32.xlu0 %v391_v33 }
  0xc8   :  { %v382_v37 = vpop.f32.mrf.mxu2 }
  0xc9   :  { %v386_v38 = vadd.f32 %v382_v37, %v297_v36 }
  0xcb   :  { %v392_v39 = vadd.f32 %v620_v30, %v386_v38 }
  0xcd   :  { %395 = vadd.xlane.f32.xlu0 %v392_v39 }
 0x138   :  { %v394_v42 = vpop.xlane.xlu0 %393 }
 0x139   :  { %v397_v43 = vmul.f32 0.03125, %v394_v42 }
 0x13b   :  { %v399_v44 = vsub.f32 %v391_v33, %v397_v43 }
 0x13d   :  { %v404_v45 = vsel %vm403_vm0, %v399_v44, 0.0 }
 0x13e   :  { %v406_v46 = vmul.f32 %v404_v45, %v404_v45 }
 0x140   :  { %408 = vadd.xlane.f32.xlu1 %v406_v46  ;;  %v396_v47 = vpop.xlane.xlu0 %395 }
 0x141   :  { %v398_v48 = vmul.f32 0.03125, %v396_v47 }
 0x143   :  { %v400_v49 = vsub.f32 %v392_v39, %v398_v48 }
 0x145   :  { %v405_v50 = vsel %vm403_vm0, %v400_v49, 0.0 }
 0x146   :  { %v407_v51 = vmul.f32 %v405_v50, %v405_v50 }
 0x148   :  { %410 = vadd.xlane.f32.xlu1 %v407_v51 }
 0x1b3   :  { %v409_v52 = vpop.xlane.xlu1 %408 }
 0x1b4   :  { %v412_v53 = vmul.f32 0.03125, %v409_v52 }
 0x1b6   :  { %v414_v54 = vadd.f32 1e-12, %v412_v53 }
 0x1b8   :  { %623 = vrsqrt.f32 %v414_v54  ;;  %vm422_vm2 = vweird.f32 %v414_v54 }
 0x1bb   :  { %v411_v55 = vpop.xlane.xlu1 %410 }
 0x1bc   :  { %v413_v56 = vmul.f32 0.03125, %v411_v55 }
 0x1be   :  { %v624_v57 = vpop.eup %623  ;;  %v415_v58 = vadd.f32 1e-12, %v413_v56 }
 0x1bf   :  { %v417_v59 = vmul.f32 %v624_v57, %v414_v54  ;;  %vm423_vm1 = vweird.f32 %v624_v57 }
 0x1c0   :  { %625 = vrsqrt.f32 %v415_v58  ;;  %vm424_vm3 = vmor %vm422_vm2, %vm423_vm1  ;;  %vm432_vm5 = vweird.f32 %v415_v58 }
 0x1c1   :  { %v418_v60 = vmul.f32 %v624_v57, %v417_v59 }
 0x1c3   :  { %v419_v61 = vmul.f32 0.5, %v418_v60 }
 0x1c5   :  { %v420_v62 = vsub.f32 1.5, %v419_v61 }
 0x1c6   :  { %v626_v63 = vpop.eup %625 }
 0x1c7   :  { %v421_v1 = vmul.f32 %v624_v57, %v420_v62  ;;  %v427_v2 = vmul.f32 %v626_v63, %v415_v58  ;;  %vm433_vm4 = vweird.f32 %v626_v63 }
 0x1c8   :  { %vm434_vm6 = vmor %vm432_vm5, %vm433_vm4 }
 0x1c9   :  { %v425_v3 = vsel %vm424_vm3, %v624_v57, %v421_v1  ;;  %v428_v4 = vmul.f32 %v626_v63, %v427_v2 }
 0x1ca   :  { %v440_v5 = vmul.f32 %v621_v0, %v425_v3 }
 0x1cb   :  { %v429_v7 = vmul.f32 0.5, %v428_v4 }
 0x1cc   :  { %v442_v8 = vmul.f32 %v440_v5, %v399_v44 }
 0x1cd   :  { %v430_v9 = vsub.f32 1.5, %v429_v7 }
 0x1ce   :  { %v448_v10 = vadd.f32 %v622_v6, %v442_v8 }
 0x1cf   :  { %v431_v11 = vmul.f32 %v626_v63, %v430_v9 }
 0x1d0   :  { %450 = vst [vmem:[#allocation13] sm:$0xff] %v448_v10 }
 0x1d1   :  { %v435_v12 = vsel %vm434_vm6, %v626_v63, %v431_v11 }
 0x1d2   :  { %v441_v13 = vmul.f32 %v621_v0, %v435_v12 }
 0x1d4   :  { %v443_v14 = vmul.f32 %v441_v13, %v400_v49 }
 0x1d6   :  { %v449_v15 = vadd.f32 %v622_v6, %v443_v14 }
 0x1d8   :  { %451 = vst [vmem:[#allocation13 + $0x8] sm:$0xff] %v449_v15 }
 0x1d9   :  { %464 = dma.vmem_to_hbm [thread:$0]  %s457_s19, 256, %s459_s22, [#allocation4], %s814_s8, %s814_s8, %s815_s1  }
 0x1da   :  { %803 = dma.done.wait [#allocation4], 256  }
 0x1db   :  { %804 = vsyncadd [#allocation4], 4294967040 }
 0x1dc   :  { %469 = vsyncpa [#allocation3], 1 }
 0x1dd   :  { %470 = vsyncpa [#allocation6], 1 }
 0x1de   :  { %471 = vsyncpa [#allocation9], 1 }
 0x1df   :  { %472 = vsyncpa [#allocation12], 1 }
 0x1e0   :  { %473 = vsyncpa [#allocation4], 1 }

</bundles_post_ra>
